<compile_context>
chip_gen: v6e
topology: v6e:2x2x1
jax: 0.10.0
libtpu: 0.0.40
codegen_flags: <defaults>
</compile_context>

<pallas_src>
import jax
import jax.numpy as jnp
from jax.experimental import pallas as pl
from jax.experimental.pallas import tpu as pltpu

NUM_CLASSES = 10
HIDDEN = 128
IMG_FEATS = 28 * 28          # 784
F_PAD = 896                  # 7 * 128  (lane-dense MXU feed)
C_PAD = 128                  # padded class dim (lane-dense logits / reductions / stores)
NEG_BIG = -1e30              # pad-class bias: exp -> 0, and 0 * (lse - logit) stays finite (no inf)
DEFAULT_TILE = 1024          # batch rows per grid step


def _round_up(x, m):
    return ((x + m - 1) // m) * m


def _train_kernel(nb_ref, x_ref, lab_ref, w1_ref, b1_ref, w2_ref, b2_ref, part_ref):
    # nb_ref:  (1,) i32 SMEM (scalar prefetch) -> true batch size (masks padded rows of last tile)
    # x_ref:   (TB, F_PAD)  bf16       lab_ref: (TB, 1) i32
    # w1_ref:  (F_PAD, HIDDEN) bf16    b1_ref:  (1, HIDDEN) f32
    # w2_ref:  (HIDDEN, C_PAD) bf16    b2_ref:  (1, C_PAD) f32  (pad classes biased to -1e30)
    # part_ref:(1, 1, C_PAD) f32  -> per-tile, per-class partial sums of (lse - logit[label])
    tb = x_ref.shape[0]

    x = x_ref[...]                                                      # bf16 tile
    h = jnp.dot(x, w1_ref[...], preferred_element_type=jnp.float32) + b1_ref[...]
    h = jnp.maximum(h, 0.0)
    logits = jnp.dot(h.astype(jnp.bfloat16), w2_ref[...],
                     preferred_element_type=jnp.float32) + b2_ref[...]  # (TB, C_PAD) f32

    # numerically stable log-sum-exp over the (padded) class lanes; pad classes contribute exp(.)=0
    m = jnp.max(logits, axis=-1, keepdims=True)
    lse = m + jnp.log(jnp.sum(jnp.exp(logits - m), axis=-1, keepdims=True))   # (TB, 1)

    labels = lab_ref[...]                                                # (TB, 1) i32
    class_ids = jax.lax.broadcasted_iota(jnp.int32, logits.shape, 1)     # (TB, C_PAD)
    row_ids = (jax.lax.broadcasted_iota(jnp.int32, (tb, 1), 0)
               + pl.program_id(0) * tb)                                  # global row index
    valid = row_ids < nb_ref[0]                                          # (TB, 1) mask

    onehot = jnp.logical_and(class_ids == labels, valid).astype(jnp.float32)  # (TB, C_PAD)
    # Per-class partial sums; summing the 128 lanes later recovers sum_rows(lse - logit[label])
    # exactly (one 1 per valid row, padded rows/classes contribute 0).
    part = jnp.sum(onehot * (lse - logits), axis=0, keepdims=True)       # (1, C_PAD)
    part_ref[...] = part[None]                                           # lane-dense (1,1,128) store


def train_model_forward(images, labels, params, *, tile=DEFAULT_TILE):
    """Mirrors TrainModel.forward: returns (avg_loss, num_samples)."""
    w1, b1, w2, b2 = params
    B = images.shape[0]

    TB = min(tile, _round_up(B, 8))
    B_pad = _round_up(B, TB)
    num_tiles = B_pad // TB

    # NCHW flatten (same as torch.flatten) -> pad features 784->896, batch B->B_pad, cast bf16.
    x = images.reshape(B, -1).astype(jnp.float32)
    x = jnp.pad(x, ((0, B_pad - B), (0, F_PAD - IMG_FEATS))).astype(jnp.bfloat16)
    lab = jnp.pad(labels.astype(jnp.int32).reshape(B, 1), ((0, B_pad - B), (0, 0)))

    # Pad / cast parameters once (resident across all grid steps).
    w1p = jnp.pad(w1.astype(jnp.float32), ((0, F_PAD - IMG_FEATS), (0, 0))).astype(jnp.bfloat16)
    b1p = b1.astype(jnp.float32).reshape(1, HIDDEN)
    w2p = jnp.pad(w2.astype(jnp.float32), ((0, 0), (0, C_PAD - NUM_CLASSES))).astype(jnp.bfloat16)
    b2p = jnp.full((1, C_PAD), NEG_BIG, jnp.float32).at[0, :NUM_CLASSES].set(
        b2.astype(jnp.float32).reshape(-1))

    nb = jnp.array([B], dtype=jnp.int32)   # scalar prefetch: true batch size

    flops = 2 * B_pad * F_PAD * HIDDEN + 2 * B_pad * HIDDEN * C_PAD
    bytes_accessed = (x.size * 2 + lab.size * 4 + w1p.size * 2 + w2p.size * 2
                      + b1p.size * 4 + b2p.size * 4 + num_tiles * C_PAD * 4)

    partials = pl.pallas_call(
        _train_kernel,
        out_shape=jax.ShapeDtypeStruct((num_tiles, 1, C_PAD), jnp.float32),
        grid_spec=pltpu.PrefetchScalarGridSpec(
            num_scalar_prefetch=1,
            grid=(num_tiles,),
            in_specs=[
                pl.BlockSpec((TB, F_PAD), lambda i, nb_ref: (i, 0)),       # x tile (pipelined)
                pl.BlockSpec((TB, 1), lambda i, nb_ref: (i, 0)),           # labels tile
                pl.BlockSpec((F_PAD, HIDDEN), lambda i, nb_ref: (0, 0)),   # W1 resident
                pl.BlockSpec((1, HIDDEN), lambda i, nb_ref: (0, 0)),       # b1 resident
                pl.BlockSpec((HIDDEN, C_PAD), lambda i, nb_ref: (0, 0)),   # W2 resident
                pl.BlockSpec((1, C_PAD), lambda i, nb_ref: (0, 0)),        # b2 resident
            ],
            out_specs=pl.BlockSpec((1, 1, C_PAD), lambda i, nb_ref: (i, 0, 0)),
        ),
        compiler_params=pltpu.CompilerParams(
            dimension_semantics=("parallel",)),   # independent tiles -> 2-TC sharding on v7x
        cost_estimate=pl.CostEstimate(
            flops=flops, transcendentals=B_pad * C_PAD, bytes_accessed=bytes_accessed),
    )(nb, x, lab, w1p, b1p, w2p, b2p)

    avg_loss = jnp.sum(partials) / B      # padded rows / padded classes contribute exactly 0
    num_samples = B                       # len(true_labels) in the PyTorch module
    return avg_loss, num_samples
    # TODO(synk): backward pass / optimizer step are outside this module's forward and not implemented.


def init_params(key):
    k1, k2, k3, k4 = jax.random.split(key, 4)
    w1 = jax.random.normal(k1, (IMG_FEATS, HIDDEN), jnp.float32) * 0.02
    b1 = jax.random.normal(k3, (HIDDEN,), jnp.float32) * 0.02
    w2 = jax.random.normal(k2, (HIDDEN, NUM_CLASSES), jnp.float32) * 0.02
    b2 = jax.random.normal(k4, (NUM_CLASSES,), jnp.float32) * 0.02
    return (w1, b1, w2, b2)


if __name__ == "__main__":
    key = jax.random.PRNGKey(0)
    kp, kx, kl = jax.random.split(key, 3)

    params = init_params(kp)
    w1, b1, w2, b2 = params

    # Small Fashion-MNIST-shaped batch (B=10 deliberately not a multiple of 8 ->
    # exercises the padded-row masking path).
    B = 10
    images = jax.random.normal(kx, (B, 1, 28, 28), jnp.float32)
    labels = jax.random.randint(kl, (B,), 0, NUM_CLASSES, jnp.int32)

    avg_loss, num_samples = train_model_forward(images, labels, params)
    jax.block_until_ready(avg_loss)

    # Pure-JAX reference using the same bf16-input / f32-accumulate numerics.
    x = images.reshape(B, -1)
    h = jnp.maximum(jnp.dot(x.astype(jnp.bfloat16), w1.astype(jnp.bfloat16),
                            preferred_element_type=jnp.float32) + b1, 0.0)
    logits = jnp.dot(h.astype(jnp.bfloat16), w2.astype(jnp.bfloat16),
                     preferred_element_type=jnp.float32) + b2
    ref = jnp.mean(jax.nn.logsumexp(logits, axis=-1)
                   - jnp.take_along_axis(logits, labels[:, None], axis=-1)[:, 0])

    assert num_samples == B
    assert bool(jnp.isfinite(avg_loss))
    assert jnp.allclose(avg_loss, ref, atol=1e-3, rtol=1e-3), (avg_loss, ref)

    print("KERNEL_OK")
</pallas_src>

<mosaic_0001>
module attributes {stable_mosaic.version = 11 : i64} {
  func.func @_train_kernel(%arg0: i32, %arg1: memref<1xi32, #tpu.memory_space<smem>>, %arg2: memref<16x896xbf16, #tpu.memory_space<vmem>>, %arg3: memref<16x1xi32, #tpu.memory_space<vmem>>, %arg4: memref<896x128xbf16, #tpu.memory_space<vmem>>, %arg5: memref<1x128xf32, #tpu.memory_space<vmem>>, %arg6: memref<128x128xbf16, #tpu.memory_space<vmem>>, %arg7: memref<1x128xf32, #tpu.memory_space<vmem>>, %arg8: memref<1x1x128xf32, #tpu.memory_space<vmem>>) attributes {dimension_semantics = [#tpu.dimension_semantics<parallel>], iteration_bounds = array<i64: 1>, scalar_prefetch = 1 : i64, scratch_operands = 0 : i64, tpu.core_type = #tpu.core_type<tc>, window_params = [{transform_indices = @transform_0, window_bounds = array<i64: 16, 896>}, {transform_indices = @transform_1, window_bounds = array<i64: 16, 1>}, {pipeline_mode = #tpu.pipeline_mode<synchronous>, transform_indices = @transform_2, window_bounds = array<i64: 896, 128>}, {pipeline_mode = #tpu.pipeline_mode<synchronous>, transform_indices = @transform_3, window_bounds = array<i64: 1, 128>}, {pipeline_mode = #tpu.pipeline_mode<synchronous>, transform_indices = @transform_4, window_bounds = array<i64: 128, 128>}, {pipeline_mode = #tpu.pipeline_mode<synchronous>, transform_indices = @transform_5, window_bounds = array<i64: 1, 128>}, {transform_indices = @transform_6, window_bounds = array<i64: 1, 1, 128>}]} {
    %c0 = arith.constant 0 : index
    %c0_0 = arith.constant 0 : index
    %0 = vector.load %arg2[%c0, %c0_0] : memref<16x896xbf16, #tpu.memory_space<vmem>>, vector<16x896xbf16>
    %c0_1 = arith.constant 0 : index
    %c0_2 = arith.constant 0 : index
    %1 = vector.load %arg4[%c0_1, %c0_2] : memref<896x128xbf16, #tpu.memory_space<vmem>>, vector<896x128xbf16>
    %cst = arith.constant dense<0.000000e+00> : vector<16x128xf32>
    %2 = tpu.matmul %0, %1, %cst {dimension_numbers = #tpu.dot_dimension_numbers<[1], [0], [0], [1], [0, 0, 1, 1], [], []>} : vector<16x896xbf16>, vector<896x128xbf16>, vector<16x128xf32> -> vector<16x128xf32>
    %c0_3 = arith.constant 0 : index
    %c0_4 = arith.constant 0 : index
    %3 = vector.load %arg5[%c0_3, %c0_4] : memref<1x128xf32, #tpu.memory_space<vmem>>, vector<1x128xf32>
    %4 = vector.broadcast %3 : vector<1x128xf32> to vector<16x128xf32>
    %5 = arith.addf %2, %4 : vector<16x128xf32>
    %cst_5 = arith.constant 0.000000e+00 : f32
    %6 = vector.broadcast %cst_5 : f32 to vector<16x128xf32>
    %7 = arith.maximumf %5, %6 : vector<16x128xf32>
    %8 = arith.truncf %7 : vector<16x128xf32> to vector<16x128xbf16>
    %c0_6 = arith.constant 0 : index
    %c0_7 = arith.constant 0 : index
    %9 = vector.load %arg6[%c0_6, %c0_7] : memref<128x128xbf16, #tpu.memory_space<vmem>>, vector<128x128xbf16>
    %cst_8 = arith.constant dense<0.000000e+00> : vector<16x128xf32>
    %10 = tpu.matmul %8, %9, %cst_8 {dimension_numbers = #tpu.dot_dimension_numbers<[1], [0], [0], [1], [0, 0, 1, 1], [], []>} : vector<16x128xbf16>, vector<128x128xbf16>, vector<16x128xf32> -> vector<16x128xf32>
    %c0_9 = arith.constant 0 : index
    %c0_10 = arith.constant 0 : index
    %11 = vector.load %arg7[%c0_9, %c0_10] : memref<1x128xf32, #tpu.memory_space<vmem>>, vector<1x128xf32>
    %12 = vector.broadcast %11 : vector<1x128xf32> to vector<16x128xf32>
    %13 = arith.addf %10, %12 : vector<16x128xf32>
    %cst_11 = arith.constant dense<0xFF800000> : vector<16xf32>
    %14 = vector.multi_reduction <maximumf>, %13, %cst_11 [1] : vector<16x128xf32> to vector<16xf32>
    %15 = vector.shape_cast %14 : vector<16xf32> to vector<16x1xf32>
    %16 = vector.broadcast %15 : vector<16x1xf32> to vector<16x128xf32>
    %17 = arith.subf %13, %16 : vector<16x128xf32>
    %18 = math.exp %17 : vector<16x128xf32>
    %cst_12 = arith.constant dense<0.000000e+00> : vector<16xf32>
    %19 = vector.multi_reduction <add>, %18, %cst_12 [1] : vector<16x128xf32> to vector<16xf32>
    %20 = vector.shape_cast %19 : vector<16xf32> to vector<16x1xf32>
    %21 = math.log %20 : vector<16x1xf32>
    %22 = arith.addf %15, %21 : vector<16x1xf32>
    %c0_13 = arith.constant 0 : index
    %c0_14 = arith.constant 0 : index
    %23 = vector.load %arg3[%c0_13, %c0_14] : memref<16x1xi32, #tpu.memory_space<vmem>>, vector<16x1xi32>
    %24 = tpu.iota {dimensions = array<i32: 1>} : vector<16x128xi32>
    %25 = tpu.iota {dimensions = array<i32: 0>} : vector<16x1xi32>
    %c16_i32 = arith.constant 16 : i32
    %26 = arith.muli %arg0, %c16_i32 : i32
    %27 = vector.broadcast %26 : i32 to vector<16x1xi32>
    %28 = arith.addi %25, %27 : vector<16x1xi32>
    %c0_15 = arith.constant 0 : index
    %29 = memref.load %arg1[%c0_15] : memref<1xi32, #tpu.memory_space<smem>>
    %30 = vector.broadcast %29 : i32 to vector<16x1xi32>
    %31 = arith.cmpi slt, %28, %30 : vector<16x1xi32>
    %32 = vector.broadcast %23 : vector<16x1xi32> to vector<16x128xi32>
    %33 = arith.cmpi eq, %24, %32 : vector<16x128xi32>
    %34 = vector.broadcast %31 : vector<16x1xi1> to vector<16x128xi1>
    %35 = arith.andi %33, %34 : vector<16x128xi1>
    %36 = arith.extui %35 : vector<16x128xi1> to vector<16x128xi32>
    %37 = arith.sitofp %36 : vector<16x128xi32> to vector<16x128xf32>
    %38 = vector.broadcast %22 : vector<16x1xf32> to vector<16x128xf32>
    %39 = arith.subf %38, %13 : vector<16x128xf32>
    %40 = arith.mulf %37, %39 : vector<16x128xf32>
    %cst_16 = arith.constant dense<0.000000e+00> : vector<128xf32>
    %41 = vector.multi_reduction <add>, %40, %cst_16 [0] : vector<16x128xf32> to vector<128xf32>
    %42 = vector.shape_cast %41 : vector<128xf32> to vector<1x128xf32>
    %43 = vector.shape_cast %42 : vector<1x128xf32> to vector<1x1x128xf32>
    %c0_17 = arith.constant 0 : index
    %c0_18 = arith.constant 0 : index
    %c0_19 = arith.constant 0 : index
    %44 = vector.load %arg8[%c0_17, %c0_18, %c0_19] : memref<1x1x128xf32, #tpu.memory_space<vmem>>, vector<1x1x128xf32>
    tpu.vector_store %arg8[%c0_17, %c0_18, %c0_19], %43 {strides = array<i32>} : memref<1x1x128xf32, #tpu.memory_space<vmem>>, vector<1x1x128xf32>,
    return
  }
  func.func @transform_0(%arg0: i32, %arg1: memref<1xi32, #tpu.memory_space<smem>>) -> (i32, i32) {
    %c0_i32 = arith.constant 0 : i32
    %c0_i32_0 = arith.constant 0 : i32
    return %arg0, %c0_i32 : i32, i32
  }
  func.func @transform_1(%arg0: i32, %arg1: memref<1xi32, #tpu.memory_space<smem>>) -> (i32, i32) {
    %c0_i32 = arith.constant 0 : i32
    %c0_i32_0 = arith.constant 0 : i32
    return %arg0, %c0_i32 : i32, i32
  }
  func.func @transform_2(%arg0: i32, %arg1: memref<1xi32, #tpu.memory_space<smem>>) -> (i32, i32) {
    %c0_i32 = arith.constant 0 : i32
    %c0_i32_0 = arith.constant 0 : i32
    %c0_i32_1 = arith.constant 0 : i32
    return %c0_i32, %c0_i32_0 : i32, i32
  }
  func.func @transform_3(%arg0: i32, %arg1: memref<1xi32, #tpu.memory_space<smem>>) -> (i32, i32) {
    %c0_i32 = arith.constant 0 : i32
    %c0_i32_0 = arith.constant 0 : i32
    %c0_i32_1 = arith.constant 0 : i32
    return %c0_i32, %c0_i32_0 : i32, i32
  }
  func.func @transform_4(%arg0: i32, %arg1: memref<1xi32, #tpu.memory_space<smem>>) -> (i32, i32) {
    %c0_i32 = arith.constant 0 : i32
    %c0_i32_0 = arith.constant 0 : i32
    %c0_i32_1 = arith.constant 0 : i32
    return %c0_i32, %c0_i32_0 : i32, i32
  }
  func.func @transform_5(%arg0: i32, %arg1: memref<1xi32, #tpu.memory_space<smem>>) -> (i32, i32) {
    %c0_i32 = arith.constant 0 : i32
    %c0_i32_0 = arith.constant 0 : i32
    %c0_i32_1 = arith.constant 0 : i32
    return %c0_i32, %c0_i32_0 : i32, i32
  }
  func.func @transform_6(%arg0: i32, %arg1: memref<1xi32, #tpu.memory_space<smem>>) -> (i32, i32, i32) {
    %c0_i32 = arith.constant 0 : i32
    %c0_i32_0 = arith.constant 0 : i32
    %c0_i32_1 = arith.constant 0 : i32
    return %arg0, %c0_i32, %c0_i32_0 : i32, i32, i32
  }
}

</mosaic_0001>

<bundles_post_ra>
// kernel: tpu_custom_call.1
= control target key start
LH: loop header
LB: loop body
LE: loop exit
PB: predicated region body
PF: predicated region fallthrough
CT: control target
= control target key end

     0   :  { %13 = vsyncpa [#allocation5], 0  ;;  %s1407_s0 = inlined_call_operand.<no memory space> [shape: s32[1], index: 0, kind: input, shape index: {}]   ;;  %s1408_s1 = inlined_call_operand.hbm [shape: bf16[16,896], index: 1, kind: input, shape index: {}]   ;;  %s1409_s2 = inlined_call_operand.vmem [shape: s32[16,1], index: 2, kind: input, shape index: {}]   ;;  %s1410_s3 = inlined_call_operand.hbm [shape: bf16[896,128], index: 3, kind: input, shape index: {}]   ;;  %s1411_s4 = inlined_call_operand.vmem [shape: f32[1,128], index: 4, kind: input, shape index: {}]   ;;  %s1412_s5 = inlined_call_operand.hbm [shape: bf16[128,128], index: 5, kind: input, shape index: {}]   ;;  %s1413_s6 = inlined_call_operand.vmem [shape: f32[1,128], index: 6, kind: input, shape index: {}]   ;;  %s1414_s7 = inlined_call_operand.hbm [shape: f32[1,1,128], index: 7, kind: output, shape index: {}]  }
   0x1   :  { %14 = vsyncpa [#allocation8], 0 }
   0x2   :  { %15 = vsyncpa [#allocation6], 0  ;;  %s1307_s24 = smov [#allocation7]  }
   0x3   :  { %s35_s25 = sshll.u32 %s1307_s24, 4  ;;  %s36_s25 = int_to_ptr.vmem [resolvable:$true] %s35_s25 }
   0x4   :  { %s1229_s26 = scalar_lea.vmem %s36_s25, 7168  ;;  %p1234_p1 = scmp.lt.s32.totalorder %s36_s25, %s36_s25 }
   0x5   :  { %p1230_p0 = scmp.ne.s32.totalorder %s36_s25, %s1229_s26  ;;  %p1235_p2 = scmp.lt.s32.totalorder %s1229_s26, %s1229_s26 }
   0x7   :  { %p1236_p3 = por %p1235_p2, %p1234_p1 }
   0x9   :  { %p1237_p4 = pnand %p1236_p3, %p1230_p0 }
   0xb   :  { %1240 = shalt.err (!%p1237_p4)
}
   0xc   :  { %s1308_s27 = smov 64   ;;  %s1309_s28 = smov 4  }
   0xd   :  { %41 = dma.hbm_to_vmem [thread:$0]  %s1410_s3, 7168, %s36_s25, [#allocation8], %s1308_s27, %s1308_s27, %s1309_s28  }
   0xe   :  { %s1310_s8 = smov [#allocation4]  }
   0xf   :  { %s21_s9 = sshll.u32 %s1310_s8, 4  ;;  %s22_s9 = int_to_ptr.vmem [resolvable:$true] %s21_s9 }
  0x10   :  { %s1249_s10 = scalar_lea.vmem %s22_s9, 896  ;;  %p1254_p6 = scmp.lt.s32.totalorder %s22_s9, %s22_s9 }
  0x11   :  { %p1250_p5 = scmp.ne.s32.totalorder %s22_s9, %s1249_s10  ;;  %p1255_p7 = scmp.lt.s32.totalorder %s1249_s10, %s1249_s10 }
  0x13   :  { %p1256_p8 = por %p1255_p7, %p1254_p6 }
  0x15   :  { %p1257_p9 = pnand %p1256_p8, %p1250_p5 }
  0x17   :  { %1260 = shalt.err (!%p1257_p9)
}
  0x18   :  { %s1311_s11 = smov 448   ;;  %s1312_s12 = smov 28  }
  0x19   :  { %27 = dma.hbm_to_vmem [thread:$0]  %s1408_s1, 896, %s22_s9, [#allocation5], %s1311_s11, %s1311_s11, %s1312_s12  }
  0x1a   :  { %s1313_s15 = smov [#allocation9]  }
  0x1b   :  { %s49_s16 = sshll.u32 %s1313_s15, 4  ;;  %s50_s16 = int_to_ptr.vmem [resolvable:$true] %s49_s16 }
  0x1c   :  { %s1269_s3 = scalar_lea.vmem %s50_s16, 1024  ;;  %p1274_p11 = scmp.lt.s32.totalorder %s50_s16, %s50_s16 }
  0x1d   :  { %p1270_p10 = scmp.ne.s32.totalorder %s50_s16, %s1269_s3  ;;  %p1275_p12 = scmp.lt.s32.totalorder %s1269_s3, %s1269_s3 }
  0x1f   :  { %p1276_p13 = por %p1275_p12, %p1274_p11 }
  0x21   :  { %p1277_p0 = pnand %p1276_p13, %p1270_p10 }
  0x23   :  { %1280 = shalt.err (!%p1277_p0)
}
  0x24   :  { %55 = dma.hbm_to_vmem [thread:$0]  %s1412_s5, 1024, %s50_s16, [#allocation8], %s1308_s27, %s1308_s27, %s1309_s28  }
  0x25   :  { %1301 = dma.done.wait [#allocation5], 896  }
  0x26   :  { %1302 = vsyncadd [#allocation5], 4294966400 }
  0x27   :  { %1303 = dma.done.wait [#allocation8], 8192  }
  0x28   :  { %1304 = vsyncadd [#allocation8], 4294959104  ;;  %v1139_v0 = vld [vmem:[#allocation7 + $0x78] sm:$0xff]   ;;  %v1143_v4 = vld [vmem:[#allocation7 + $0x70] sm:$0xff]   ;;  %v1314_v36 = vmov 0.0   ;;  %vm1315_vm0 = vmmov 0  }
  0x29   :  { %v1140_v1 = vld [vmem:[#allocation7 + $0xf8] sm:$0xff]   ;;  %1002 = vmatprep.subr.bf16.mxu0 %v1139_v0  ;;  %v1144_v5 = vld [vmem:[#allocation7 + $0xf0] sm:$0xff]   ;;  %v1147_v8 = vld [vmem:[#allocation7 + $0x68] sm:$0xff]  }
  0x2a   :  { %v1141_v2 = vld [vmem:[#allocation7 + $0x38] sm:$0xff]   ;;  %1024 = vmatprep.subr.bf16.mxu1 %v1140_v1  ;;  %v1145_v6 = vld [vmem:[#allocation7 + $0x30] sm:$0xff]   ;;  %v1148_v9 = vld [vmem:[#allocation7 + $0xe8] sm:$0xff]  }
  0x2b   :  { %v1142_v3 = vld [vmem:[#allocation7 + $0xb8] sm:$0xff]   ;;  %1003 = vmatpush3.bf16.msra.mxu0 %v1141_v2  ;;  %v1146_v7 = vld [vmem:[#allocation7 + $0xb0] sm:$0xff]   ;;  %v1149_v10 = vld [vmem:[#allocation7 + $0x28] sm:$0xff]  }
  0x2c   :  { %1025 = vmatpush3.bf16.msra.mxu1 %v1142_v3  ;;  %1004 = vmatprep.subr.bf16.mxu0 %v1143_v4  ;;  %v1150_v11 = vld [vmem:[#allocation7 + $0xa8] sm:$0xff]   ;;  %v1151_v12 = vld [vmem:[#allocation7 + $0x60] sm:$0xff]   ;;  %v1155_v16 = vld [vmem:[#allocation7 + $0x58] sm:$0xff]  }
  0x2d   :  { %1026 = vmatprep.subr.bf16.mxu1 %v1144_v5  ;;  %v1152_v13 = vld [vmem:[#allocation7 + $0xe0] sm:$0xff]   ;;  %v1156_v17 = vld [vmem:[#allocation7 + $0xd8] sm:$0xff]   ;;  %v1159_v20 = vld [vmem:[#allocation7 + $0x50] sm:$0xff]  }
  0x2e   :  { %v1153_v14 = vld [vmem:[#allocation7 + $0x20] sm:$0xff]   ;;  %v1157_v18 = vld [vmem:[#allocation7 + $0x18] sm:$0xff]   ;;  %v1160_v21 = vld [vmem:[#allocation7 + $0xd0] sm:$0xff]  }
  0x2f   :  { %1005 = vmatpush3.bf16.msra.mxu0 %v1145_v6  ;;  %v1154_v15 = vld [vmem:[#allocation7 + $0xa0] sm:$0xff]   ;;  %v1158_v19 = vld [vmem:[#allocation7 + $0x98] sm:$0xff]   ;;  %v1161_v22 = vld [vmem:[#allocation7 + $0x10] sm:$0xff]  }
  0x30   :  { %1027 = vmatpush3.bf16.msra.mxu1 %v1146_v7  ;;  %1006 = vmatprep.subr.bf16.mxu0 %v1147_v8  ;;  %v1162_v23 = vld [vmem:[#allocation7 + $0x90] sm:$0xff]   ;;  %v1163_v24 = vld [vmem:[#allocation7 + $0x48] sm:$0xff]   ;;  %v1167_v28 = vld [vmem:[#allocation7 + $0x40] sm:$0xff]  }
  0x31   :  { %1028 = vmatprep.subr.bf16.mxu1 %v1148_v9  ;;  %v1164_v25 = vld [vmem:[#allocation7 + $0xc8] sm:$0xff]   ;;  %v1168_v29 = vld [vmem:[#allocation7 + $0xc0] sm:$0xff]   ;;  %v1176_v35 = vld [vmem:[#allocation4 + $0xc] ss:$28 sps:$4 sm:$0xff]  }
  0x32   :  { %v1165_v26 = vld [vmem:[#allocation7 + $0x8] sm:$0xff]   ;;  %v1169_v30 = vld [vmem:[#allocation7] sm:$0xff]   ;;  %v1177_v37 = vld [vmem:[#allocation7 + $0x178] sm:$0xff]   ;;  %640 = vmatprep.mubr.bf16.mxu1 %v1176_v35 }
  0x33   :  { %1007 = vmatpush3.bf16.msra.mxu0 %v1149_v10  ;;  %v1166_v27 = vld [vmem:[#allocation7 + $0x88] sm:$0xff]   ;;  %v1170_v31 = vld [vmem:[#allocation7 + $0x80] sm:$0xff]   ;;  %v1178_v38 = vld [vmem:[#allocation7 + $0x138] sm:$0xff]  }
  0x34   :  { %1029 = vmatpush3.bf16.msra.mxu1 %v1150_v11  ;;  %1008 = vmatprep.subr.bf16.mxu0 %v1151_v12  ;;  %v1171_v32 = vld [vmem:[#allocation4] ss:$28 sps:$4 sm:$0xff]   ;;  %v1174_v34 = vld [vmem:[#allocation4 + $0x8] ss:$28 sps:$4 sm:$0xff]   ;;  %v1179_v39 = vld [vmem:[#allocation7 + $0x1b8] sm:$0xff]  }
  0x35   :  { %1030 = vmatprep.subr.bf16.mxu1 %v1152_v13  ;;  %v1173_v33 = vld [vmem:[#allocation4 + $0x4] ss:$28 sps:$4 sm:$0xff]   ;;  %v1180_v40 = vld [vmem:[#allocation7 + $0x170] sm:$0xff]   ;;  %v1186_v46 = vld [vmem:[#allocation7 + $0x160] sm:$0xff]  }
  0x36   :  { %599 = vmatprep.mubr.bf16.mxu0 %v1173_v33  ;;  %v1181_v41 = vld [vmem:[#allocation7 + $0x130] sm:$0xff]   ;;  %v1183_v43 = vld [vmem:[#allocation7 + $0x168] sm:$0xff]   ;;  %v1187_v47 = vld [vmem:[#allocation7 + $0x120] sm:$0xff]  }
  0x37   :  { %1009 = vmatpush3.bf16.msra.mxu0 %v1153_v14  ;;  %v1182_v42 = vld [vmem:[#allocation7 + $0x1b0] sm:$0xff]   ;;  %v1184_v44 = vld [vmem:[#allocation7 + $0x128] sm:$0xff]   ;;  %v1188_v48 = vld [vmem:[#allocation7 + $0x1a0] sm:$0xff]  }
  0x38   :  { %1031 = vmatpush3.bf16.msra.mxu1 %v1154_v15  ;;  %1010 = vmatprep.subr.bf16.mxu0 %v1155_v16  ;;  %v1185_v45 = vld [vmem:[#allocation7 + $0x1a8] sm:$0xff]   ;;  %v1189_v49 = vld [vmem:[#allocation7 + $0x158] sm:$0xff]   ;;  %v1192_v52 = vld [vmem:[#allocation7 + $0x150] sm:$0xff]  }
  0x39   :  { %1032 = vmatprep.subr.bf16.mxu1 %v1156_v17  ;;  %v1190_v50 = vld [vmem:[#allocation7 + $0x118] sm:$0xff]   ;;  %v1193_v53 = vld [vmem:[#allocation7 + $0x110] sm:$0xff]   ;;  %v1195_v55 = vld [vmem:[#allocation7 + $0x148] sm:$0xff]  }
  0x3a   :  { %v1191_v51 = vld [vmem:[#allocation7 + $0x198] sm:$0xff]   ;;  %v1194_v54 = vld [vmem:[#allocation7 + $0x190] sm:$0xff]   ;;  %v1196_v56 = vld [vmem:[#allocation7 + $0x108] sm:$0xff]  }
  0x3b   :  { %1011 = vmatpush3.bf16.msra.mxu0 %v1157_v18  ;;  %v1197_v57 = vld [vmem:[#allocation7 + $0x188] sm:$0xff]   ;;  %v1198_v58 = vld [vmem:[#allocation7 + $0x140] sm:$0xff]   ;;  %v1203_v59 = vld [vmem:[#allocation4 + $0x14] ss:$28 sps:$4 sm:$0xff]  }
  0x3c   :  { %1033 = vmatpush3.bf16.msra.mxu1 %v1158_v19  ;;  %1012 = vmatprep.subr.bf16.mxu0 %v1159_v20  ;;  %v1199_v60 = vld [vmem:[#allocation7 + $0x100] sm:$0xff]   ;;  %v1201_v62 = vld [vmem:[#allocation4 + $0x10] ss:$28 sps:$4 sm:$0xff]   ;;  %v1207_v2 = vld [vmem:[#allocation9 + $0x28] sm:$0xff]  }
  0x3d   :  { %1034 = vmatprep.subr.bf16.mxu1 %v1160_v21  ;;  %v1200_v61 = vld [vmem:[#allocation7 + $0x180] sm:$0xff]   ;;  %v1205_v0 = vld [vmem:[#allocation9 + $0x38] sm:$0xff]   ;;  %v1206_v1 = vld [vmem:[#allocation9 + $0x30] sm:$0xff]  }
  0x3e   :  { %v1204_v63 = vld [vmem:[#allocation4 + $0x18] ss:$28 sps:$4 sm:$0xff]   ;;  %v1210_v5 = vld [vmem:[#allocation9 + $0x10] sm:$0xff]   ;;  %v1211_v6 = vld [vmem:[#allocation9 + $0x8] sm:$0xff]  }
  0x3f   :  { %1013 = vmatpush3.bf16.msra.mxu0 %v1161_v22  ;;  %v1208_v3 = vld [vmem:[#allocation9 + $0x20] sm:$0xff]   ;;  %v1209_v4 = vld [vmem:[#allocation9 + $0x18] sm:$0xff]   ;;  %v927_v15 = vld [vmem:[%s1411_s4] ss:$0 sm:$0xff] }
  0x40   :  { %1035 = vmatpush3.bf16.msra.mxu1 %v1162_v23  ;;  %1014 = vmatprep.subr.bf16.mxu0 %v1163_v24  ;;  %v1212_v7 = vld [vmem:[#allocation9] sm:$0xff]  }
  0x41   :  { %1036 = vmatprep.subr.bf16.mxu1 %v1164_v25 }
  0x43   :  { %1015 = vmatpush3.bf16.msra.mxu0 %v1165_v26 }
  0x44   :  { %1037 = vmatpush3.bf16.msra.mxu1 %v1166_v27  ;;  %1016 = vmatprep.subr.bf16.mxu0 %v1167_v28 }
  0x45   :  { %1038 = vmatprep.subr.bf16.mxu1 %v1168_v29 }
  0x47   :  { %1017 = vmatpush3.bf16.msra.mxu0 %v1169_v30 }
  0x48   :  { %1039 = vmatpush3.bf16.msra.mxu1 %v1170_v31  ;;  %1046 = vmatprep.subr.bf16.mxu0 %v1177_v37 }
  0x49   :  { %1086 = vmatprep.subr.bf16.mxu1 %v1314_v36 }
  0x4a   :  { %600 = vmatmul.mubr.bf16.vlgmr.msra.gmra.mxu0 %v1171_v32 }
  0x4b   :  { %641 = vmatmul.mubr.bf16.vlgmr.msra.gmra.mxu1 %v1174_v34  ;;  %1047 = vmatpush3.bf16.msra.mxu0 %v1178_v38 }
  0x4c   :  { %1102 = vmatprep.mubr.msk.bf16.mxu1 %vm1315_vm0, %v1314_v36  ;;  %1087 = vmatpush3.bf16.msra.mxu1 %v1179_v39 }
  0x4d   :  { %1048 = vmatprep.subr.bf16.mxu0 %v1180_v40  ;;  %1088 = vmatprep.subr.bf16.mxu1 %v1314_v36 }
  0x4e   :  { %681 = vmatprep.mubr.bf16.mxu0 %v1203_v59 }
  0x4f   :  { %1049 = vmatpush3.bf16.msra.mxu0 %v1181_v41 }
  0x50   :  { %1089 = vmatpush3.bf16.msra.mxu1 %v1182_v42  ;;  %1050 = vmatprep.subr.bf16.mxu0 %v1183_v43  ;;  %v991_v43 = vld [vmem:[%s1413_s6] ss:$0 sm:$0xff] }
  0x51   :  { %1090 = vmatprep.subr.bf16.mxu1 %v1314_v36 }
  0x53   :  { %1051 = vmatpush3.bf16.msra.mxu0 %v1184_v44 }
  0x54   :  { %1091 = vmatpush3.bf16.msra.mxu1 %v1185_v45  ;;  %1052 = vmatprep.subr.bf16.mxu0 %v1186_v46 }
  0x55   :  { %1092 = vmatprep.subr.bf16.mxu1 %v1314_v36 }
  0x57   :  { %1053 = vmatpush3.bf16.msra.mxu0 %v1187_v47 }
  0x58   :  { %1093 = vmatpush3.bf16.msra.mxu1 %v1188_v48  ;;  %1054 = vmatprep.subr.bf16.mxu0 %v1189_v49 }
  0x59   :  { %1094 = vmatprep.subr.bf16.mxu1 %v1314_v36 }
  0x5b   :  { %1055 = vmatpush3.bf16.msra.mxu0 %v1190_v50  ;;  %v866_v50 = vld [vmem:[%s1409_s2] sm:$0xff] }
  0x5c   :  { %1095 = vmatpush3.bf16.msra.mxu1 %v1191_v51  ;;  %1056 = vmatprep.subr.bf16.mxu0 %v1192_v52  ;;  %v1316_v51 = vmov 0  }
  0x5d   :  { %1096 = vmatprep.subr.bf16.mxu1 %v1314_v36  ;;  %1137 = vset.pattern.permute.xlu0 %v1316_v51 }
  0x5e   :  { %1138 = vset.pattern.permute.xlu1 %v1316_v51 }
  0x5f   :  { %1057 = vmatpush3.bf16.msra.mxu0 %v1193_v53 }
  0x60   :  { %1097 = vmatpush3.bf16.msra.mxu1 %v1194_v54  ;;  %1058 = vmatprep.subr.bf16.mxu0 %v1195_v55 }
  0x61   :  { %1098 = vmatprep.subr.bf16.mxu1 %v1314_v36 }
  0x63   :  { %1059 = vmatpush3.bf16.msra.mxu0 %v1196_v56 }
  0x64   :  { %1099 = vmatpush3.bf16.msra.mxu1 %v1197_v57  ;;  %1060 = vmatprep.subr.bf16.mxu0 %v1198_v58 }
  0x65   :  { %1100 = vmatprep.subr.bf16.mxu1 %v1314_v36 }
  0x67   :  { %1061 = vmatpush3.bf16.msra.mxu0 %v1199_v60  ;;  %v867_v60 = vld [vmem:[%s1409_s2 + $0x8] sm:$0xff] }
  0x68   :  { %1101 = vmatpush3.bf16.msra.mxu1 %v1200_v61  ;;  %1106 = vmatprep.subr.bf16.mxu0 %v1314_v36 }
  0x6a   :  { %682 = vmatmul.mubr.bf16.vlgmr.msra.gmra.mxu0 %v1201_v62 }
  0x6b   :  { %1103 = vmatmul.mubr.bf16.vlgmr.msra.gmra.mxu1 %v1204_v63  ;;  %1122 = vmatprep.mubr.msk.bf16.mxu0 %vm1315_vm0, %v1314_v36  ;;  %v868_v63 = vlaneseq }
  0x6c   :  { %1107 = vmatpush3.bf16.msra.mxu0 %v1205_v0 }
  0x6d   :  { %1108 = vmatprep.subr.bf16.mxu0 %v1314_v36  ;;  %v871_v0 = vshrl.u32 %v868_v63, 7 }
  0x70   :  { %1109 = vmatpush3.bf16.msra.mxu0 %v1206_v1  ;;  %v869_v1 = vand.u32 127, %v868_v63 }
  0x71   :  { %1110 = vmatprep.subr.bf16.mxu0 %v1314_v36 }
  0x74   :  { %1111 = vmatpush3.bf16.msra.mxu0 %v1207_v2  ;;  %v878_v2 = vstv %s1407_s0  ;;  %s1317_s0 = smov [#allocation10]  }
  0x75   :  { %1112 = vmatprep.subr.bf16.mxu0 %v1314_v36  ;;  %vm879_vm1 = vcmp.lt.s32.totalorder %v871_v0, %v878_v2  ;;  %s917_s2 = sshll.u32 %s1317_s0, 4  ;;  %s918_s2 = int_to_ptr.vmem [resolvable:$true] %s917_s2 }
  0x76   :  { %s1281_s25 = scalar_lea.vmem %s918_s2, 16  ;;  %s1285_s26 = scalar_lea.vmem %s918_s2, 32 }
  0x77   :  { %p1282_p1 = scmp.ne.s32.totalorder %s918_s2, %s1281_s25  ;;  %p1286_p2 = scmp.lt.s32.totalorder %s918_s2, %s918_s2 }
  0x78   :  { %1113 = vmatpush3.bf16.msra.mxu0 %v1208_v3  ;;  %p1287_p3 = scmp.lt.s32.totalorder %s1285_s26, %s1281_s25 }
  0x79   :  { %1114 = vmatprep.subr.bf16.mxu0 %v1314_v36 }
  0x7a   :  { %p1288_p4 = por %p1287_p3, %p1286_p2 }
  0x7c   :  { %1115 = vmatpush3.bf16.msra.mxu0 %v1209_v4  ;;  %v872_v4 = vadd.s32 8, %v871_v0  ;;  %p1289_p5 = pnand %p1288_p4, %p1282_p1 }
  0x7d   :  { %1116 = vmatprep.subr.bf16.mxu0 %v1314_v36 }
  0x7e   :  { %vm880_vm3 = vcmp.lt.s32.totalorder %v872_v4, %v878_v2 }
  0x80   :  { %1117 = vmatpush3.bf16.msra.mxu0 %v1210_v5 }
  0x81   :  { %1118 = vmatprep.subr.bf16.mxu0 %v1314_v36 }
  0x84   :  { %1119 = vmatpush3.bf16.msra.mxu0 %v1211_v6 }
  0x85   :  { %1120 = vmatprep.subr.bf16.mxu0 %v1314_v36 }
  0x88   :  { %1121 = vmatpush3.bf16.msra.mxu0 %v1212_v7 }
 0x10a   :  { %v1018_v8 = vpop.f32.mrf.mxu0 }
 0x10b   :  { %v1040_v9 = vpop.f32.mrf.mxu1 }
 0x10c   :  { %v1019_v10 = vpop.f32.mrf.mxu0 }
 0x10d   :  { %v1041_v11 = vpop.f32.mrf.mxu1  ;;  %v1020_v13 = vadd.f32 %v1019_v10, %v1018_v8 }
 0x10e   :  { %v1021_v12 = vpop.f32.mrf.mxu0  ;;  %v1042_v18 = vadd.f32 %v1041_v11, %v1040_v9 }
 0x10f   :  { %v1043_v14 = vpop.f32.mrf.mxu1  ;;  %v602_v17 = vadd.f32 %v1020_v13, %v927_v15 }
 0x110   :  { %v1022_v16 = vpop.f32.mrf.mxu0 }
 0x111   :  { %v1023_v19 = vadd.f32 %v1022_v16, %v1021_v12  ;;  %v1044_v20 = vpop.f32.mrf.mxu1  ;;  %v643_v24 = vadd.f32 %v1042_v18, %v602_v17 }
 0x112   :  { %v1045_v26 = vadd.f32 %v1044_v20, %v1043_v14 }
 0x113   :  { %v605_v25 = vadd.f32 %v1023_v19, %v927_v15 }
 0x115   :  { %v646_v33 = vadd.f32 %v1045_v26, %v605_v25 }
 0x12a   :  { %v1062_v21 = vpop.f32.mrf.mxu0 }
 0x12b   :  { %v724_v22 = vpop.f32.mrf.mxu1 }
 0x12c   :  { %v1063_v23 = vpop.f32.mrf.mxu0 }
 0x12d   :  { %v1064_v27 = vadd.f32 %v1063_v23, %v1062_v21  ;;  %v1104_v28 = vpop.f32.mrf.mxu1 }
 0x12e   :  { %v1065_v29 = vpop.f32.mrf.mxu0 }
 0x12f   :  { %v684_v30 = vadd.f32 %v1064_v27, %v643_v24  ;;  %v727_v31 = vpop.f32.mrf.mxu1 }
 0x130   :  { %v1066_v32 = vpop.f32.mrf.mxu0 }
 0x131   :  { %v1067_v34 = vadd.f32 %v1066_v32, %v1065_v29  ;;  %v1105_v35 = vpop.f32.mrf.mxu1  ;;  %v725_v37 = vadd.f32 %v724_v22, %v684_v30 }
 0x133   :  { %v687_v38 = vadd.f32 %v1067_v34, %v646_v33  ;;  %v731_v40 = vmax.f32 %v725_v37, 0.0 }
 0x135   :  { %v728_v39 = vadd.f32 %v727_v31, %v687_v38 }
 0x137   :  { %v732_v41 = vmax.f32 %v728_v39, 0.0 }
 0x139   :  { %v733_v42 = vpack.c.bf16 %v732_v41, %v731_v40 }
 0x13b   :  { %1123 = vmatmul.mubr.bf16.vlgmr.msra.gmra.mxu0 %v733_v42 }
 0x1fb   :  { %v839_v44 = vpop.f32.mrf.mxu0 }
 0x1fc   :  { %v840_v45 = vadd.f32 %v991_v43, %v839_v44 }
 0x1fd   :  { %v1124_v46 = vpop.f32.mrf.mxu0 }
 0x1fe   :  { %846 = vmax.xlane.f32.xlu0 %v840_v45 }
 0x1ff   :  { %v842_v47 = vpop.f32.mrf.mxu0 }
 0x200   :  { %v843_v48 = vadd.f32 %v991_v43, %v842_v47 }
 0x201   :  { %v1125_v49 = vpop.f32.mrf.mxu0 }
 0x202   :  { %848 = vmax.xlane.f32.xlu0 %v843_v48 }
 0x218   :  { %882 = vperm.xlu0 %1137, %v866_v50  }
 0x287   :  { %v847_v52 = vpop.xlane.xlu0 %846 }
 0x288   :  { %v850_v53 = vsub.f32 %v840_v45, %v847_v52 }
 0x28a   :  { %v852_v54 = vmul.f32 1.442695, %v850_v53 }
 0x28b   :  { %v849_v55 = vpop.xlane.xlu0 %848 }
 0x28c   :  { %1213 = vpow2.f32 %v852_v54  ;;  %v851_v56 = vsub.f32 %v843_v48, %v849_v55 }
 0x28e   :  { %v854_v57 = vmul.f32 1.442695, %v851_v56 }
 0x290   :  { %1215 = vpow2.f32 %v854_v57 }
 0x293   :  { %v883_v3 = vpop.permute.xlu0 %882 }
 0x294   :  { %vm887_vm2 = vcmp.eq.s32.totalorder %v869_v1, %v883_v3 }
 0x295   :  { %vm893_vm5 = vmand %vm887_vm2, %vm879_vm1 }
 0x296   :  { %v1000_v13 = vsel %vm893_vm5, 1.0, %v1314_v36 }
 0x299   :  { %v1214_v58 = vpop.eup %1213 }
 0x29a   :  { %856 = vadd.xlane.f32.xlu1 %v1214_v58 }
 0x29d   :  { %v1216_v59 = vpop.eup %1215 }
 0x29e   :  { %858 = vadd.xlane.f32.xlu1 %v1216_v59 }
 0x2af   :  { %885 = vperm.xlu1 %1138, %v867_v60  }
 0x323   :  { %v857_v61 = vpop.xlane.xlu1 %856 }
 0x324   :  { %1217 = vlog2.f32 %v857_v61 }
 0x327   :  { %v859_v62 = vpop.xlane.xlu1 %858 }
 0x328   :  { %1219 = vlog2.f32 %v859_v62 }
 0x32b   :  { %v886_v5 = vpop.permute.xlu1 %885 }
 0x32c   :  { %vm888_vm4 = vcmp.eq.s32.totalorder %v869_v1, %v886_v5 }
 0x32d   :  { %vm894_vm6 = vmand %vm888_vm4, %vm880_vm3 }
 0x32e   :  { %v1001_v14 = vsel %vm894_vm6, 1.0, %v1314_v36 }
 0x331   :  { %v1218_v6 = vpop.eup %1217 }
 0x332   :  { %v861_v7 = vmul.f32 0.6931472, %v1218_v6 }
 0x334   :  { %v864_v8 = vadd.f32 %v861_v7, %v847_v52 }
 0x335   :  { %v1220_v9 = vpop.eup %1219 }
 0x336   :  { %v863_v10 = vmul.f32 0.6931472, %v1220_v9  ;;  %v899_v12 = vsub.f32 %v864_v8, %v840_v45 }
 0x338   :  { %v865_v11 = vadd.f32 %v863_v10, %v849_v55  ;;  %v901_v16 = vmul.f32 %v1000_v13, %v899_v12 }
 0x33a   :  { %v900_v15 = vsub.f32 %v865_v11, %v843_v48 }
 0x33c   :  { %v902_v17 = vmul.f32 %v1001_v14, %v900_v15 }
 0x33e   :  { %v903_v18 = vadd.f32 %v902_v17, %v901_v16 }
 0x340   :  { %v904_v19 = vrot.slane %v903_v18, 4 }
 0x342   :  { %v905_v20 = vadd.f32 %v904_v19, %v903_v18 }
 0x344   :  { %v906_v21 = vrot.slane %v905_v20, 2 }
 0x346   :  { %v907_v22 = vadd.f32 %v906_v21, %v905_v20 }
 0x348   :  { %v908_v23 = vrot.slane %v907_v22, 1 }
 0x34a   :  { %v909_v24 = vadd.f32 %v908_v23, %v907_v22 }
 0x34c   :  { %910 = vst [vmem:[#allocation10] sm:$0x1] %v909_v24 }
 0x34d   :  { %1292 = shalt.err (!%p1289_p5)
}
 0x34e   :  { %920 = dma.vmem_to_hbm [thread:$0]  %s918_s2, 16, %s1414_s7, [#allocation6]  }
 0x34f   :  { %1305 = dma.done.wait [#allocation6], 16  }
 0x350   :  { %1306 = vsyncadd [#allocation6], 4294967280 }
 0x351   :  { %924 = vsyncpa [#allocation5], 1 }
 0x352   :  { %925 = vsyncpa [#allocation8], 1 }
 0x353   :  { %926 = vsyncpa [#allocation6], 1 }

</bundles_post_ra>
